<compile_context>
chip_gen: v7x
topology: tpu7x:2x2x1
jax: 0.10.0
libtpu: 0.0.40
codegen_flags: <defaults>
</compile_context>

<pallas_src>
import functools

import jax
import jax.numpy as jnp
from jax.experimental import pallas as pl
from jax.experimental.pallas import tpu as pltpu


def _round_up(x, m):
    return (x + m - 1) // m * m


# ---------------------------------------------------------------------------
# Hardware queries / feature probes
# ---------------------------------------------------------------------------

@functools.lru_cache(maxsize=1)
def _vmem_capacity_bytes():
    try:
        return int(pltpu.get_tpu_info().vmem_capacity_bytes)
    except Exception:
        return 64 * 1024 * 1024      # conservative (v7x-sized) fallback


def _vmem_budget_bytes():
    # ~3/4 of per-core VMEM with headroom: ~96 MiB on v5e/v6e, ~48 MiB on v7x.
    return max(32 * 1024 * 1024, (_vmem_capacity_bytes() * 3) // 4)


def _probe_kernel(x_ref, o_ref):
    o_ref[...] = x_ref[...] + 1.0


@functools.lru_cache(maxsize=1)
def _buffered_one_supported():
    """One-time feature probe for pl.Buffered(1) (single-buffered residents)."""
    try:
        fn = pl.pallas_call(
            _probe_kernel,
            out_shape=jax.ShapeDtypeStruct((8, 128), jnp.float32),
            grid_spec=pltpu.PrefetchScalarGridSpec(
                num_scalar_prefetch=0,
                grid=(1,),
                in_specs=[pl.BlockSpec((8, 128), lambda i: (0, 0),
                                       pipeline_mode=pl.Buffered(1))],
                out_specs=pl.BlockSpec((8, 128), lambda i: (0, 0)),
            ),
        )
        jax.block_until_ready(fn(jnp.zeros((8, 128), jnp.float32)))
        return True
    except Exception:
        return False


# ---------------------------------------------------------------------------
# Kernel
# ---------------------------------------------------------------------------

def _ffn_kernel(x_ref, w1_ref, b1_ref, w2_ref, b2_ref, g_ref, beta_ref,
                o_ref, acc_ref, *, eps: float, matmul_dtype):
    k = pl.program_id(1)

    def dot(a, b):
        # Keep MXU operands in their (native or requested) narrow dtype and
        # accumulate in f32.
        if matmul_dtype is not None:
            a = a.astype(matmul_dtype)
            b = b.astype(matmul_dtype)
        return jnp.dot(a, b, preferred_element_type=jnp.float32)

    @pl.when(k == 0)
    def _():
        # Seed the accumulator with the residual and the second conv bias so
        # the epilogue needs no extra full-tile VPU passes; x is only cast to
        # f32 here (no copy lives through the matmul hot loop).
        acc_ref[...] = (x_ref[...].astype(jnp.float32)
                        + b2_ref[...].astype(jnp.float32))

    # First 1x1 conv (x @ W1 FF-tile) + bias + ReLU.
    h = dot(x_ref[...], w1_ref[...])
    h = jnp.maximum(h + b1_ref[...].astype(jnp.float32), 0.0)

    # Second 1x1 conv partial product, accumulated in f32 scratch.
    h_in = h if matmul_dtype is not None else h.astype(w2_ref.dtype)
    acc_ref[...] += dot(h_in, w2_ref[...])

    @pl.when(k == pl.num_programs(1) - 1)
    def _():
        # residual + b2 already inside acc; LayerNorm over H (biased variance,
        # eps matches the PyTorch default).
        r = acc_ref[...]
        mean = jnp.mean(r, axis=-1, keepdims=True)
        centered = r - mean
        var = jnp.mean(centered * centered, axis=-1, keepdims=True)
        out = (centered * jax.lax.rsqrt(var + eps)
               * g_ref[...].astype(jnp.float32)
               + beta_ref[...].astype(jnp.float32))
        o_ref[...] = out.astype(o_ref.dtype)


# ---------------------------------------------------------------------------
# Planning (generation / VMEM aware tiling)
# ---------------------------------------------------------------------------

def _plan(M, H, x_dtype, w_dtype, tile_m_req, buffered_one_ok):
    FF = 4 * H
    budget = _vmem_budget_bytes()
    xb = jnp.dtype(x_dtype).itemsize
    wb = jnp.dtype(w_dtype).itemsize

    # Bigger row tiles on 128 MiB-VMEM chips (v5e/v6e); 256 on v7x-sized VMEM.
    if tile_m_req is None:
        tile_m_req = 512 if budget >= 72 * 1024 * 1024 else 256
    tm_cap = max(8, _round_up(min(tile_m_req, max(M, 1)), 8))

    tm_candidates = []
    tm = tm_cap
    while tm >= 128:
        tm_candidates.append(tm)
        tm //= 2
    if not tm_candidates:
        tm_candidates = [tm_cap]

    # Largest first: tile_ff == FF means resident weights (single FF step).
    ff_candidates = [FF] + [c for c in (8192, 4096, 2048, 1024, 512, 256, 128)
                            if c < FF and FF % c == 0]

    def estimate(tm_, tff_, n_ff_):
        resident = (n_ff_ == 1)
        wbuf = 1 if (resident and buffered_one_ok) else 2
        vm = wbuf * (H * tff_ + tff_ * H + tff_) * wb       # w1 + w2 + b1 tiles
        vm += 2 * 3 * H * wb                                 # b2, gamma, beta
        vm += 2 * 2 * tm_ * H * xb                           # x + out, dbl-buffered
        vm += tm_ * H * 4                                    # f32 accumulator
        vm += tm_ * tff_ * (4 + wb)                          # f32 hidden + cast copy
        return vm

    headroom = int(budget * 0.9)
    # Prefer resident weights (no per-M-tile re-read), then largest row tile.
    for tff in ff_candidates:
        n_ff = FF // tff
        for tm_ in tm_candidates:
            if estimate(tm_, tff, n_ff) <= headroom:
                return tm_, tff, budget
    # Smallest-footprint fallback.
    return tm_candidates[-1], ff_candidates[-1], budget


# ---------------------------------------------------------------------------
# pallas_call builder + public wrapper
# ---------------------------------------------------------------------------

def _build_ffn_call(M, H, out_dtype, w_dtype, *, tile_m, tile_ff, eps,
                    matmul_dtype, buffered_one_ok, vmem_limit):
    FF = 4 * H
    grid = (M // tile_m, FF // tile_ff)
    n_m, n_ff = grid

    # Constant-index blocks become single-buffered VMEM residents when the
    # runtime supports Buffered(1); streamed weight tiles keep the default
    # double-buffered pipeline so their DMA hides behind the matmuls.
    res_w = ({"pipeline_mode": pl.Buffered(1)}
             if (buffered_one_ok and n_ff == 1) else {})
    res_p = {"pipeline_mode": pl.Buffered(1)} if buffered_one_ok else {}

    x_item = jnp.dtype(out_dtype).itemsize
    w_item = jnp.dtype(w_dtype).itemsize
    # Streamed weights are re-read once per M tile; resident weights once.
    weight_passes = n_m if n_ff > 1 else 1
    cost = pl.CostEstimate(
        flops=4 * M * H * FF,                               # two matmuls
        transcendentals=M,                                   # rsqrt per row
        bytes_accessed=(2 * M * H * x_item
                        + weight_passes * (2 * H * FF + FF + 3 * H) * w_item))

    kernel = functools.partial(_ffn_kernel, eps=eps, matmul_dtype=matmul_dtype)

    return pl.pallas_call(
        kernel,
        out_shape=jax.ShapeDtypeStruct((M, H), out_dtype),
        grid_spec=pltpu.PrefetchScalarGridSpec(
            num_scalar_prefetch=0,
            grid=grid,
            in_specs=[
                pl.BlockSpec((tile_m, H), lambda i, k: (i, 0)),            # x
                pl.BlockSpec((H, tile_ff), lambda i, k: (0, k), **res_w),  # w1
                pl.BlockSpec((1, tile_ff), lambda i, k: (0, k), **res_w),  # b1
                pl.BlockSpec((tile_ff, H), lambda i, k: (k, 0), **res_w),  # w2
                pl.BlockSpec((1, H), lambda i, k: (0, 0), **res_p),        # b2
                pl.BlockSpec((1, H), lambda i, k: (0, 0), **res_p),        # gamma
                pl.BlockSpec((1, H), lambda i, k: (0, 0), **res_p),        # beta
            ],
            out_specs=pl.BlockSpec((tile_m, H), lambda i, k: (i, 0)),
            scratch_shapes=[pltpu.VMEM((tile_m, H), jnp.float32)],
        ),
        compiler_params=pltpu.CompilerParams(
            dimension_semantics=("parallel", "arbitrary"),
            vmem_limit_bytes=vmem_limit),
        cost_estimate=cost,
    )


def ffn_forward(x, w1, b1, w2, b2, gamma, beta, *, eps=1e-5, tile_m=None,
                matmul_dtype=None):
    """x: (B, T, H).  Weights in matmul convention for the 1x1 convs:
       w1: (H, 4H), b1: (1, 4H), w2: (4H, H), b2/gamma/beta: (1, H).

       For best throughput in real configs use H a multiple of 128 (lane-dense
       stores / unmasked LayerNorm reductions) and bf16 params + activations
       (bf16 MXU), or pass matmul_dtype=jnp.bfloat16 to force bf16 MXU
       operands with f32 accumulation when the caller's data is f32."""
    B, T, H = x.shape
    M = B * T
    x2 = x.reshape(M, H)

    buffered_ok = _buffered_one_supported()
    tm, tff, budget = _plan(M, H, x.dtype, w1.dtype, tile_m, buffered_ok)

    Mp = _round_up(M, tm)
    n_m = Mp // tm
    # v7x has 2 TensorCores sharing the parallel M axis: keep the M-tile count
    # even so neither core idles.  (v7x heuristic: <= 80 MiB VMEM per core.)
    if (n_m > 1 and n_m % 2 == 1
            and _vmem_capacity_bytes() <= 80 * 1024 * 1024):
        n_m += 1
        Mp = n_m * tm
    if Mp != M:
        x2 = jnp.pad(x2, ((0, Mp - M), (0, 0)))

    out = _build_ffn_call(
        Mp, H, x.dtype, w1.dtype, tile_m=tm, tile_ff=tff, eps=eps,
        matmul_dtype=matmul_dtype, buffered_one_ok=buffered_ok,
        vmem_limit=budget,
    )(x2, w1, b1, w2, b2, gamma, beta)

    if Mp != M:
        out = out[:M]
    return out.reshape(B, T, H)


# ---------------------------------------------------------------------------
# Parameter init (matches the PyTorch module) + pure-JAX reference
# ---------------------------------------------------------------------------

def _xavier_uniform(key, shape, gain):
    fan_out, fan_in = shape
    limit = gain * jnp.sqrt(6.0 / (fan_in + fan_out))
    return jax.random.uniform(key, shape, jnp.float32, -limit, limit)


def init_ffn_params(key, num_hidden):
    """Conv1d weights are xavier_uniform (relu gain for w_1, linear gain for
    w_2); Conv1d-style uniform biases.  PyTorch Conv1d weight is (out, in, 1);
    its transpose (in, out) is stored so the kernel computes x @ W."""
    k1, k2, k3, k4 = jax.random.split(key, 4)
    H = num_hidden
    relu_gain = jnp.sqrt(2.0)
    w1 = _xavier_uniform(k1, (4 * H, H), relu_gain).T            # (H, 4H)
    w2 = _xavier_uniform(k2, (H, 4 * H), 1.0).T                  # (4H, H)
    b1 = jax.random.uniform(k3, (1, 4 * H), jnp.float32,
                            -1.0 / jnp.sqrt(H), 1.0 / jnp.sqrt(H))
    b2 = jax.random.uniform(k4, (1, H), jnp.float32,
                            -1.0 / jnp.sqrt(4.0 * H), 1.0 / jnp.sqrt(4.0 * H))
    gamma = jnp.ones((1, H), jnp.float32)
    beta = jnp.zeros((1, H), jnp.float32)
    return w1, b1, w2, b2, gamma, beta


def ffn_reference(x, w1, b1, w2, b2, gamma, beta, eps=1e-5):
    h = jnp.maximum(x @ w1 + b1[0], 0.0)
    y = h @ w2 + b2[0]
    r = y + x
    mean = jnp.mean(r, axis=-1, keepdims=True)
    var = jnp.mean((r - mean) ** 2, axis=-1, keepdims=True)
    return (r - mean) * jax.lax.rsqrt(var + eps) * gamma[0] + beta[0]


if __name__ == "__main__":
    # Dropout is declared in the surrounding FFN's __init__ but never applied
    # in forward(), so it is intentionally omitted here.
    key = jax.random.PRNGKey(0)
    k_x, k_x2, k_p = jax.random.split(key, 3)

    B, T, H = 2, 8, 32
    params = init_ffn_params(k_p, H)

    # Case 1: small, exact-tile input (f32 path).
    x = jax.random.normal(k_x, (B, T, H), jnp.float32)
    out = ffn_forward(x, *params)
    jax.block_until_ready(out)
    ref = ffn_reference(x, *params)
    assert out.shape == (B, T, H)
    assert jnp.allclose(out, ref, atol=1e-3, rtol=1e-3), "mismatch vs reference"

    # Case 2: ragged B*T to exercise the padded last-tile path.
    x2 = jax.random.normal(k_x2, (2, 13, H), jnp.float32)
    out2 = ffn_forward(x2, *params)
    jax.block_until_ready(out2)
    ref2 = ffn_reference(x2, *params)
    assert out2.shape == (2, 13, H)
    assert jnp.allclose(out2, ref2, atol=1e-3, rtol=1e-3), "mismatch (ragged)"

    # Case 3: bf16 activations + weights -> bf16 MXU operands, f32 accumulate.
    params_bf16 = tuple(p.astype(jnp.bfloat16) for p in params)
    x_bf16 = x.astype(jnp.bfloat16)
    out3 = ffn_forward(x_bf16, *params_bf16)
    jax.block_until_ready(out3)
    ref3 = ffn_reference(x_bf16.astype(jnp.float32),
                         *(p.astype(jnp.float32) for p in params_bf16))
    assert out3.shape == (B, T, H) and out3.dtype == jnp.bfloat16
    assert jnp.allclose(out3.astype(jnp.float32), ref3, atol=5e-2, rtol=5e-2), \
        "mismatch (bf16)"

    print("KERNEL_OK")
</pallas_src>

<mosaic_0001>
module attributes {stable_mosaic.version = 11 : i64} {
  func.func @_probe_kernel(%arg0: i32, %arg1: memref<8x128xf32, #tpu.memory_space<vmem>>, %arg2: memref<8x128xf32, #tpu.memory_space<vmem>>) attributes {dimension_semantics = [#tpu.dimension_semantics<arbitrary>], iteration_bounds = array<i64: 1>, scalar_prefetch = 0 : i64, scratch_operands = 0 : i64, tpu.core_type = #tpu.core_type<tc>, window_params = [{pipeline_mode = #tpu.pipeline_mode<synchronous>, transform_indices = @transform_0, window_bounds = array<i64: 8, 128>}, {pipeline_mode = #tpu.pipeline_mode<synchronous>, transform_indices = @transform_1, window_bounds = array<i64: 8, 128>}]} {
    %c0 = arith.constant 0 : index
    %c0_0 = arith.constant 0 : index
    %0 = vector.load %arg1[%c0, %c0_0] : memref<8x128xf32, #tpu.memory_space<vmem>>, vector<8x128xf32>
    %cst = arith.constant 1.000000e+00 : f32
    %1 = vector.broadcast %cst : f32 to vector<8x128xf32>
    %2 = arith.addf %0, %1 : vector<8x128xf32>
    %c0_1 = arith.constant 0 : index
    %c0_2 = arith.constant 0 : index
    %3 = vector.load %arg2[%c0_1, %c0_2] : memref<8x128xf32, #tpu.memory_space<vmem>>, vector<8x128xf32>
    tpu.vector_store %arg2[%c0_1, %c0_2], %2 {strides = array<i32>} : memref<8x128xf32, #tpu.memory_space<vmem>>, vector<8x128xf32>,
    return
  }
  func.func @transform_0(%arg0: i32) -> (i32, i32) {
    %c0_i32 = arith.constant 0 : i32
    %c0_i32_0 = arith.constant 0 : i32
    %c0_i32_1 = arith.constant 0 : i32
    return %c0_i32, %c0_i32_0 : i32, i32
  }
  func.func @transform_1(%arg0: i32) -> (i32, i32) {
    %c0_i32 = arith.constant 0 : i32
    %c0_i32_0 = arith.constant 0 : i32
    %c0_i32_1 = arith.constant 0 : i32
    return %c0_i32, %c0_i32_0 : i32, i32
  }
}

module attributes {stable_mosaic.version = 11 : i64} {
  func.func @_ffn_kernel(%arg0: i32, %arg1: i32, %arg2: memref<16x32xf32, #tpu.memory_space<vmem>>, %arg3: memref<32x128xf32, #tpu.memory_space<vmem>>, %arg4: memref<1x128xf32, #tpu.memory_space<vmem>>, %arg5: memref<128x32xf32, #tpu.memory_space<vmem>>, %arg6: memref<1x32xf32, #tpu.memory_space<vmem>>, %arg7: memref<1x32xf32, #tpu.memory_space<vmem>>, %arg8: memref<1x32xf32, #tpu.memory_space<vmem>>, %arg9: memref<16x32xf32, #tpu.memory_space<vmem>>, %arg10: memref<16x32xf32, #tpu.memory_space<vmem>>) attributes {dimension_semantics = [#tpu.dimension_semantics<parallel>, #tpu.dimension_semantics<arbitrary>], iteration_bounds = array<i64: 1, 1>, scalar_prefetch = 0 : i64, scratch_operands = 1 : i64, tpu.core_type = #tpu.core_type<tc>, window_params = [{transform_indices = @transform_0, window_bounds = array<i64: 16, 32>}, {transform_indices = @transform_1, window_bounds = array<i64: 32, 128>}, {transform_indices = @transform_2, window_bounds = array<i64: 1, 128>}, {transform_indices = @transform_3, window_bounds = array<i64: 128, 32>}, {pipeline_mode = #tpu.pipeline_mode<synchronous>, transform_indices = @transform_4, window_bounds = array<i64: 1, 32>}, {pipeline_mode = #tpu.pipeline_mode<synchronous>, transform_indices = @transform_5, window_bounds = array<i64: 1, 32>}, {pipeline_mode = #tpu.pipeline_mode<synchronous>, transform_indices = @transform_6, window_bounds = array<i64: 1, 32>}, {transform_indices = @transform_7, window_bounds = array<i64: 16, 32>}]} {
    %c0_i32 = arith.constant 0 : i32
    %0 = arith.cmpi eq, %arg1, %c0_i32 : i32
    %1 = arith.extui %0 : i1 to i32
    %c0_i32_0 = arith.constant 0 : i32
    %2 = arith.cmpi ne, %1, %c0_i32_0 : i32
    scf.if %2 {
      %c0_16 = arith.constant 0 : index
      %c0_17 = arith.constant 0 : index
      %19 = vector.load %arg2[%c0_16, %c0_17] : memref<16x32xf32, #tpu.memory_space<vmem>>, vector<16x32xf32>
      %c0_18 = arith.constant 0 : index
      %c0_19 = arith.constant 0 : index
      %20 = vector.load %arg6[%c0_18, %c0_19] : memref<1x32xf32, #tpu.memory_space<vmem>>, vector<1x32xf32>
      %21 = vector.broadcast %20 : vector<1x32xf32> to vector<16x32xf32>
      %22 = arith.addf %19, %21 : vector<16x32xf32>
      %c0_20 = arith.constant 0 : index
      %c0_21 = arith.constant 0 : index
      %23 = vector.load %arg10[%c0_20, %c0_21] : memref<16x32xf32, #tpu.memory_space<vmem>>, vector<16x32xf32>
      tpu.vector_store %arg10[%c0_20, %c0_21], %22 {strides = array<i32>} : memref<16x32xf32, #tpu.memory_space<vmem>>, vector<16x32xf32>,
    } else {
    }
    %c0 = arith.constant 0 : index
    %c0_1 = arith.constant 0 : index
    %3 = vector.load %arg2[%c0, %c0_1] : memref<16x32xf32, #tpu.memory_space<vmem>>, vector<16x32xf32>
    %c0_2 = arith.constant 0 : index
    %c0_3 = arith.constant 0 : index
    %4 = vector.load %arg3[%c0_2, %c0_3] : memref<32x128xf32, #tpu.memory_space<vmem>>, vector<32x128xf32>
    %cst = arith.constant dense<0.000000e+00> : vector<16x128xf32>
    %5 = tpu.matmul %3, %4, %cst {dimension_numbers = #tpu.dot_dimension_numbers<[1], [0], [0], [1], [0, 0, 1, 1], [], []>} : vector<16x32xf32>, vector<32x128xf32>, vector<16x128xf32> -> vector<16x128xf32>
    %c0_4 = arith.constant 0 : index
    %c0_5 = arith.constant 0 : index
    %6 = vector.load %arg4[%c0_4, %c0_5] : memref<1x128xf32, #tpu.memory_space<vmem>>, vector<1x128xf32>
    %7 = vector.broadcast %6 : vector<1x128xf32> to vector<16x128xf32>
    %8 = arith.addf %5, %7 : vector<16x128xf32>
    %cst_6 = arith.constant 0.000000e+00 : f32
    %9 = vector.broadcast %cst_6 : f32 to vector<16x128xf32>
    %10 = arith.maximumf %8, %9 : vector<16x128xf32>
    %c0_7 = arith.constant 0 : index
    %c0_8 = arith.constant 0 : index
    %11 = vector.load %arg10[%c0_7, %c0_8] : memref<16x32xf32, #tpu.memory_space<vmem>>, vector<16x32xf32>
    %c0_9 = arith.constant 0 : index
    %c0_10 = arith.constant 0 : index
    %12 = vector.load %arg5[%c0_9, %c0_10] : memref<128x32xf32, #tpu.memory_space<vmem>>, vector<128x32xf32>
    %cst_11 = arith.constant dense<0.000000e+00> : vector<16x32xf32>
    %13 = tpu.matmul %10, %12, %cst_11 {dimension_numbers = #tpu.dot_dimension_numbers<[1], [0], [0], [1], [0, 0, 1, 1], [], []>} : vector<16x128xf32>, vector<128x32xf32>, vector<16x32xf32> -> vector<16x32xf32>
    %14 = arith.addf %11, %13 : vector<16x32xf32>
    %c0_12 = arith.constant 0 : index
    %c0_13 = arith.constant 0 : index
    %15 = vector.load %arg10[%c0_12, %c0_13] : memref<16x32xf32, #tpu.memory_space<vmem>>, vector<16x32xf32>
    tpu.vector_store %arg10[%c0_12, %c0_13], %14 {strides = array<i32>} : memref<16x32xf32, #tpu.memory_space<vmem>>, vector<16x32xf32>,
    %c0_i32_14 = arith.constant 0 : i32
    %16 = arith.cmpi eq, %arg1, %c0_i32_14 : i32
    %17 = arith.extui %16 : i1 to i32
    %c0_i32_15 = arith.constant 0 : i32
    %18 = arith.cmpi ne, %17, %c0_i32_15 : i32
    scf.if %18 {
      %c0_16 = arith.constant 0 : index
      %c0_17 = arith.constant 0 : index
      %19 = vector.load %arg10[%c0_16, %c0_17] : memref<16x32xf32, #tpu.memory_space<vmem>>, vector<16x32xf32>
      %cst_18 = arith.constant dense<0.000000e+00> : vector<16xf32>
      %20 = vector.multi_reduction <add>, %19, %cst_18 [1] : vector<16x32xf32> to vector<16xf32>
      %21 = vector.shape_cast %20 : vector<16xf32> to vector<16x1xf32>
      %cst_19 = arith.constant 3.200000e+01 : f32
      %22 = vector.broadcast %cst_19 : f32 to vector<16x1xf32>
      %23 = arith.divf %21, %22 : vector<16x1xf32>
      %24 = vector.broadcast %23 : vector<16x1xf32> to vector<16x32xf32>
      %25 = arith.subf %19, %24 : vector<16x32xf32>
      %26 = arith.mulf %25, %25 : vector<16x32xf32>
      %cst_20 = arith.constant dense<0.000000e+00> : vector<16xf32>
      %27 = vector.multi_reduction <add>, %26, %cst_20 [1] : vector<16x32xf32> to vector<16xf32>
      %28 = vector.shape_cast %27 : vector<16xf32> to vector<16x1xf32>
      %cst_21 = arith.constant 3.200000e+01 : f32
      %29 = vector.broadcast %cst_21 : f32 to vector<16x1xf32>
      %30 = arith.divf %28, %29 : vector<16x1xf32>
      %cst_22 = arith.constant 9.99999974E-6 : f32
      %31 = vector.broadcast %cst_22 : f32 to vector<16x1xf32>
      %32 = arith.addf %30, %31 : vector<16x1xf32>
      %33 = math.rsqrt %32 : vector<16x1xf32>
      %34 = vector.broadcast %33 : vector<16x1xf32> to vector<16x32xf32>
      %35 = arith.mulf %25, %34 : vector<16x32xf32>
      %c0_23 = arith.constant 0 : index
      %c0_24 = arith.constant 0 : index
      %36 = vector.load %arg7[%c0_23, %c0_24] : memref<1x32xf32, #tpu.memory_space<vmem>>, vector<1x32xf32>
      %37 = vector.broadcast %36 : vector<1x32xf32> to vector<16x32xf32>
      %38 = arith.mulf %35, %37 : vector<16x32xf32>
      %c0_25 = arith.constant 0 : index
      %c0_26 = arith.constant 0 : index
      %39 = vector.load %arg8[%c0_25, %c0_26] : memref<1x32xf32, #tpu.memory_space<vmem>>, vector<1x32xf32>
      %40 = vector.broadcast %39 : vector<1x32xf32> to vector<16x32xf32>
      %41 = arith.addf %38, %40 : vector<16x32xf32>
      %c0_27 = arith.constant 0 : index
      %c0_28 = arith.constant 0 : index
      %42 = vector.load %arg9[%c0_27, %c0_28] : memref<16x32xf32, #tpu.memory_space<vmem>>, vector<16x32xf32>
      tpu.vector_store %arg9[%c0_27, %c0_28], %41 {strides = array<i32>} : memref<16x32xf32, #tpu.memory_space<vmem>>, vector<16x32xf32>,
    } else {
    }
    return
  }
  func.func @transform_0(%arg0: i32, %arg1: i32) -> (i32, i32) {
    %c0_i32 = arith.constant 0 : i32
    %c0_i32_0 = arith.constant 0 : i32
    return %arg0, %c0_i32 : i32, i32
  }
  func.func @transform_1(%arg0: i32, %arg1: i32) -> (i32, i32) {
    %c0_i32 = arith.constant 0 : i32
    %c0_i32_0 = arith.constant 0 : i32
    return %c0_i32, %arg1 : i32, i32
  }
  func.func @transform_2(%arg0: i32, %arg1: i32) -> (i32, i32) {
    %c0_i32 = arith.constant 0 : i32
    %c0_i32_0 = arith.constant 0 : i32
    return %c0_i32, %arg1 : i32, i32
  }
  func.func @transform_3(%arg0: i32, %arg1: i32) -> (i32, i32) {
    %c0_i32 = arith.constant 0 : i32
    %c0_i32_0 = arith.constant 0 : i32
    return %arg1, %c0_i32 : i32, i32
  }
  func.func @transform_4(%arg0: i32, %arg1: i32) -> (i32, i32) {
    %c0_i32 = arith.constant 0 : i32
    %c0_i32_0 = arith.constant 0 : i32
    %c0_i32_1 = arith.constant 0 : i32
    return %c0_i32, %c0_i32_0 : i32, i32
  }
  func.func @transform_5(%arg0: i32, %arg1: i32) -> (i32, i32) {
    %c0_i32 = arith.constant 0 : i32
    %c0_i32_0 = arith.constant 0 : i32
    %c0_i32_1 = arith.constant 0 : i32
    return %c0_i32, %c0_i32_0 : i32, i32
  }
  func.func @transform_6(%arg0: i32, %arg1: i32) -> (i32, i32) {
    %c0_i32 = arith.constant 0 : i32
    %c0_i32_0 = arith.constant 0 : i32
    %c0_i32_1 = arith.constant 0 : i32
    return %c0_i32, %c0_i32_0 : i32, i32
  }
  func.func @transform_7(%arg0: i32, %arg1: i32) -> (i32, i32) {
    %c0_i32 = arith.constant 0 : i32
    %c0_i32_0 = arith.constant 0 : i32
    return %arg0, %c0_i32 : i32, i32
  }
}

</mosaic_0001>

<bundles_post_ra>
// kernel: tpu_custom_call.1
= control target key start
LH: loop header
LB: loop body
LE: loop exit
PB: predicated region body
PF: predicated region fallthrough
CT: control target
= control target key end

     0   :  { %6 = vsyncpa [#allocation3], 0  ;;  %s125_s0 = inlined_call_operand.hbm [shape: f32[8,128], index: 0, kind: input, shape index: {}]   ;;  %s126_s1 = inlined_call_operand.hbm [shape: f32[8,128], index: 1, kind: output, shape index: {}]  }
   0x1   :  { %7 = vsyncpa [#allocation4], 0  ;;  %s89_s6 = smov [#allocation2]   ;;  %s41_s10 = scalar_lea.hbm %s125_s0, 128 }
   0x2   :  { %s14_s7 = sshll.u32 %s89_s6, 4  ;;  %p42_p0 = scmp.ne.s32.totalorder %s125_s0, %s41_s10  ;;  %s15_s7 = int_to_ptr.vmem [resolvable:$true] %s14_s7 }
   0x3   :  { %p45_p1 = scmp.lt.u32.totalorder %s41_s10, %s125_s0 }
   0x5   :  { %p47_p2 = pnand %p45_p1, %p42_p0 }
   0x7   :  { %50 = shalt.err (!%p47_p2)
}
   0x8   :  { %s51_s15 = scalar_lea.vmem %s15_s7, 128  ;;  %p56_p4 = scmp.lt.s32.totalorder %s15_s7, %s15_s7 }
   0x9   :  { %p52_p3 = scmp.ne.s32.totalorder %s15_s7, %s51_s15  ;;  %p57_p5 = scmp.lt.s32.totalorder %s51_s15, %s51_s15 }
   0xb   :  { %p58_p6 = por %p57_p5, %p56_p4 }
   0xd   :  { %p59_p7 = pnand %p58_p6, %p52_p3 }
   0xf   :  { %62 = shalt.err (!%p59_p7)
}
  0x10   :  { %17 = dma.hbm_to_vmem [thread:$0]  %s125_s0, 128, %s15_s7, [#allocation3]  }
  0x11   :  { %85 = dma.done.wait [#allocation3], 128  }
  0x12   :  { %86 = vsyncadd [#allocation3], 4294967168  ;;  %s90_s18 = smov [#allocation5]   ;;  %v21_v0 = vld [vmem:[#allocation2] sm:$0xff] }
  0x13   :  { %s30_s19 = sshll.u32 %s90_s18, 4  ;;  %v22_v1 = vadd.f32 1.0, %v21_v0  ;;  %s31_s19 = int_to_ptr.vmem [resolvable:$true] %s30_s19 }
  0x14   :  { %s63_s20 = scalar_lea.vmem %s31_s19, 128  ;;  %p68_p9 = scmp.lt.s32.totalorder %s31_s19, %s31_s19 }
  0x15   :  { %23 = vst [vmem:[#allocation5] sm:$0xff] %v22_v1  ;;  %p64_p8 = scmp.ne.s32.totalorder %s31_s19, %s63_s20  ;;  %p69_p10 = scmp.lt.s32.totalorder %s63_s20, %s63_s20 }
  0x17   :  { %p70_p11 = por %p69_p10, %p68_p9 }
  0x19   :  { %p71_p12 = pnand %p70_p11, %p64_p8 }
  0x1b   :  { %74 = shalt.err (!%p71_p12)
}
  0x1c   :  { %s75_s23 = scalar_lea.hbm %s126_s1, 128 }
  0x1d   :  { %p76_p13 = scmp.ne.s32.totalorder %s126_s1, %s75_s23  ;;  %p79_p0 = scmp.lt.u32.totalorder %s75_s23, %s126_s1 }
  0x1f   :  { %p81_p1 = pnand %p79_p0, %p76_p13 }
  0x21   :  { %84 = shalt.err (!%p81_p1)
}
  0x22   :  { %33 = dma.vmem_to_hbm [thread:$0]  %s31_s19, 128, %s126_s1, [#allocation4]  }
  0x23   :  { %87 = dma.done.wait [#allocation4], 128  }
  0x24   :  { %88 = vsyncadd [#allocation4], 4294967168 }
  0x25   :  { %37 = vsyncpa [#allocation3], 1 }
  0x26   :  { %38 = vsyncpa [#allocation4], 1 }

// kernel: tpu_custom_call.1
= control target key start
LH: loop header
LB: loop body
LE: loop exit
PB: predicated region body
PF: predicated region fallthrough
CT: control target
= control target key end

     0   :  { %vm42_vm0 = vcmask 261120   ;;  %s599_s0 = inlined_call_operand.vmem [shape: f32[16,32], index: 0, kind: input, shape index: {}]   ;;  %s600_s1 = inlined_call_operand.vmem [shape: f32[32,128], index: 1, kind: input, shape index: {}]   ;;  %s601_s2 = inlined_call_operand.vmem [shape: f32[1,128], index: 2, kind: input, shape index: {}]   ;;  %s602_s3 = inlined_call_operand.vmem [shape: f32[128,32], index: 3, kind: input, shape index: {}]   ;;  %s603_s4 = inlined_call_operand.vmem [shape: f32[1,32], index: 4, kind: input, shape index: {}]   ;;  %s604_s5 = inlined_call_operand.vmem [shape: f32[1,32], index: 5, kind: input, shape index: {}]   ;;  %s605_s6 = inlined_call_operand.vmem [shape: f32[1,32], index: 6, kind: input, shape index: {}]   ;;  %s606_s7 = inlined_call_operand.hbm [shape: f32[16,32], index: 7, kind: output, shape index: {}]  }
   0x1   :  { %v47_v0 = vld [vmem:[%s600_s1] sm:$0xff]  ;;  %v48_v1 = vld [vmem:[%s600_s1 + $0x8] sm:$0xff]  ;;  %v49_v2 = vld [vmem:[%s600_s1 + $0x10] sm:$0xff] }
   0x2   :  { %v383_v3 = vpack.c.bf16 %v48_v1, %v47_v0  ;;  %v50_v4 = vld [vmem:[%s600_s1 + $0x18] sm:$0xff]  ;;  %v45_v5 = vld [vmem:[%s599_s0] sm:$0xff]  ;;  %v145_v8 = vld [vmem:[%s602_s3 + $0x8] sm:$0xff] }
   0x3   :  { %v387_v6 = vpack.c.bf16 %v50_v4, %v49_v2  ;;  %345 = vmatprep.mubr.msk.f32.mxu0 %vm42_vm0, %v45_v5  ;;  %v144_v7 = vld [vmem:[%s602_s3] sm:$0xff]  ;;  %v146_v9 = vld [vmem:[%s602_s3 + $0x10] sm:$0xff]  ;;  %v147_v11 = vld [vmem:[%s602_s3 + $0x18] sm:$0xff] }
   0x4   :  { %384 = vmatprep.subr.bf16.mxu0 %v383_v3  ;;  %v391_v10 = vpack.c.bf16 %v145_v8, %v144_v7  ;;  %v395_v12 = vpack.c.bf16 %v147_v11, %v146_v9  ;;  %v148_v13 = vld [vmem:[%s602_s3 + $0x20] sm:$0xff]  ;;  %v149_v14 = vld [vmem:[%s602_s3 + $0x28] sm:$0xff] }
   0x5   :  { %386 = vmatpush3.bf16.msra.mxu0 %v383_v3 }
   0x6   :  { %388 = vmatprep.subr.bf16.mxu0 %v387_v6  ;;  %392 = vmatprep.subr.bf16.mxu1 %v391_v10 }
   0x7   :  { %394 = vmatpush3.bf16.msra.mxu1 %v391_v10 }
   0x8   :  { %12 = vsyncpa [#allocation4], 0  ;;  %396 = vmatprep.subr.bf16.mxu1 %v395_v12  ;;  %v399_v15 = vpack.c.bf16 %v149_v14, %v148_v13  ;;  %v46_v16 = vld [vmem:[%s599_s0 + $0x8] sm:$0xff]  ;;  %v150_v17 = vld [vmem:[%s602_s3 + $0x30] sm:$0xff]  ;;  %s454_s24 = smov [#allocation3]  }
   0x9   :  { %390 = vmatpush3.bf16.msra.mxu0 %v387_v6  ;;  %v151_v18 = vld [vmem:[%s602_s3 + $0x38] sm:$0xff]  ;;  %v152_v20 = vld [vmem:[%s602_s3 + $0x40] sm:$0xff]  ;;  %v153_v21 = vld [vmem:[%s602_s3 + $0x48] sm:$0xff]  ;;  %s296_s25 = sshll.u32 %s454_s24, 4  ;;  %s297_s25 = int_to_ptr.vmem [resolvable:$true] %s296_s25 }
   0xa   :  { %v403_v19 = vpack.c.bf16 %v151_v18, %v150_v17  ;;  %v407_v22 = vpack.c.bf16 %v153_v21, %v152_v20  ;;  %v154_v23 = vld [vmem:[%s602_s3 + $0x50] sm:$0xff]  ;;  %v155_v24 = vld [vmem:[%s602_s3 + $0x58] sm:$0xff]  ;;  %v156_v26 = vld [vmem:[%s602_s3 + $0x60] sm:$0xff]  ;;  %s430_s26 = scalar_lea.vmem %s297_s25, 256  ;;  %p435_p1 = scmp.lt.s32.totalorder %s297_s25, %s297_s25 }
   0xb   :  { %398 = vmatpush3.bf16.msra.mxu1 %v395_v12  ;;  %v411_v25 = vpack.c.bf16 %v155_v24, %v154_v23  ;;  %v157_v27 = vld [vmem:[%s602_s3 + $0x68] sm:$0xff]  ;;  %v158_v29 = vld [vmem:[%s602_s3 + $0x70] sm:$0xff]  ;;  %v159_v30 = vld [vmem:[%s602_s3 + $0x78] sm:$0xff]  ;;  %p431_p0 = scmp.ne.s32.totalorder %s297_s25, %s430_s26  ;;  %p436_p2 = scmp.lt.s32.totalorder %s430_s26, %s430_s26 }
   0xc   :  { %346 = vmatmul.mubr.msk.f32.vlgmr.msra.gmra.mrb[0].mxu0 %vm42_vm0, %v46_v16  ;;  %400 = vmatprep.subr.bf16.mxu1 %v399_v15  ;;  %v415_v28 = vpack.c.bf16 %v157_v27, %v156_v26  ;;  %v419_v31 = vpack.c.bf16 %v159_v30, %v158_v29  ;;  %v307_v32 = vld [vmem:[%s603_s4] ss:$0 sm:$0xff] }
   0xd   :  { %v41_v33 = vadd.f32 %v307_v32, %v46_v16  ;;  %v308_v34 = vld [vmem:[%s601_s2] ss:$0 sm:$0xff]  ;;  %v40_v41 = vadd.f32 %v307_v32, %v45_v5  ;;  %p437_p3 = por %p436_p2, %p435_p1 }
   0xe   :  { %v311_v5 = vld [vmem:[%s604_s5] ss:$0 sm:$0xff] }
   0xf   :  { %402 = vmatpush3.bf16.msra.mxu1 %v399_v15  ;;  %44 = vst.msk [vmem:[#allocation2 + $0x8] sm:$0xff] %vm42_vm0, %v41_v33  ;;  %43 = vst.msk [vmem:[#allocation2] sm:$0xff] %vm42_vm0, %v40_v41  ;;  %v312_v7 = vld [vmem:[%s605_s6] ss:$0 sm:$0xff]  ;;  %p438_p4 = pnand %p437_p3, %p431_p0 }
  0x10   :  { %404 = vmatprep.subr.bf16.mxu1 %v403_v19 }
  0x13   :  { %406 = vmatpush3.bf16.msra.mxu1 %v403_v19 }
  0x14   :  { %408 = vmatprep.subr.bf16.mxu1 %v407_v22 }
  0x16   :  { %v143_v42 = vld [vmem:[#allocation2 + $0x8] sm:$0xff]  ;;  %v142_v43 = vld [vmem:[#allocation2] sm:$0xff] }
  0x17   :  { %410 = vmatpush3.bf16.msra.mxu1 %v407_v22 }
  0x18   :  { %412 = vmatprep.subr.bf16.mxu1 %v411_v25 }
  0x1b   :  { %414 = vmatpush3.bf16.msra.mxu1 %v411_v25 }
  0x1c   :  { %416 = vmatprep.subr.bf16.mxu1 %v415_v28 }
  0x1f   :  { %418 = vmatpush3.bf16.msra.mxu1 %v415_v28 }
  0x20   :  { %420 = vmatprep.subr.bf16.mxu1 %v419_v31 }
  0x23   :  { %422 = vmatpush3.bf16.msra.mxu1 %v419_v31 }
  0xdf   :  { %v347_v35 = vpop.f32.mrb[0].mxu0 }
  0xe0   :  { %v137_v36 = vadd.f32 %v347_v35, %v308_v34  ;;  %v131_v37 = vpop.f32.mrb[1].mxu0 }
  0xe1   :  { %v132_v38 = vadd.f32 %v308_v34, %v131_v37 }
  0xe2   :  { %v141_v40 = vmax.f32 %v137_v36, 0.0 }
  0xe3   :  { %v140_v39 = vmax.f32 %v132_v38, 0.0 }
  0xe5   :  { %380 = vmatprep.mubr.f32.mxu1 %v140_v39 }
  0xe6   :  { %381 = vmatmul.mubr.f32.vlgmr.msra.gmra.mrb[0].mxu1 %v141_v40 }
 0x1b9   :  { %v382_v44 = vpop.f32.mrb[0].mxu1 }
 0x1ba   :  { %v236_v45 = vadd.f32 %v382_v44, %v143_v42  ;;  %v226_v46 = vpop.f32.mrb[1].mxu1 }
 0x1bb   :  { %v235_v47 = vadd.f32 %v226_v46, %v142_v43 }
 0x1bc   :  { %238 = vst.msk [vmem:[#allocation2 + $0x8] sm:$0xff] %vm42_vm0, %v236_v45 }
 0x1bd   :  { %237 = vst.msk [vmem:[#allocation2] sm:$0xff] %vm42_vm0, %v235_v47 }
 0x1c3   :  { %v243_v50 = vld [vmem:[#allocation2 + $0x8] sm:$0xff] }
 0x1c4   :  { %v242_v48 = vld [vmem:[#allocation2] sm:$0xff]  ;;  %v247_v51 = vsel %vm42_vm0, %v243_v50, 0.0 }
 0x1c5   :  { %v244_v49 = vsel %vm42_vm0, %v242_v48, 0.0 }
 0x1c6   :  { %245 = vadd.xlane.f32.xlu0 %v244_v49 }
 0x1ca   :  { %248 = vadd.xlane.f32.xlu0 %v247_v51 }
 0x253   :  { %v246_v52 = vpop.xlane.xlu0 %245 }
 0x254   :  { %v251_v53 = vmul.f32 0.03125, %v246_v52 }
 0x256   :  { %v253_v54 = vsub.f32 %v242_v48, %v251_v53 }
 0x257   :  { %v249_v55 = vpop.xlane.xlu0 %248 }
 0x258   :  { %v252_v56 = vmul.f32 0.03125, %v249_v55  ;;  %v255_v57 = vmul.f32 %v253_v54, %v253_v54 }
 0x25a   :  { %v254_v58 = vsub.f32 %v243_v50, %v252_v56  ;;  %v257_v59 = vsel %vm42_vm0, %v255_v57, 0.0 }
 0x25b   :  { %258 = vadd.xlane.f32.xlu1 %v257_v59 }
 0x25c   :  { %v256_v60 = vmul.f32 %v254_v58, %v254_v58 }
 0x25e   :  { %v260_v61 = vsel %vm42_vm0, %v256_v60, 0.0 }
 0x25f   :  { %261 = vadd.xlane.f32.xlu1 %v260_v61 }
 0x2e8   :  { %v259_v62 = vpop.xlane.xlu1 %258 }
 0x2e9   :  { %v263_v63 = vmul.f32 0.03125, %v259_v62 }
 0x2eb   :  { %v265_v0 = vadd.f32 1e-05, %v263_v63 }
 0x2ec   :  { %v262_v1 = vpop.xlane.xlu1 %261 }
 0x2ed   :  { %426 = vrsqrt.f32 %v265_v0  ;;  %v264_v2 = vmul.f32 0.03125, %v262_v1 }
 0x2ef   :  { %v266_v3 = vadd.f32 1e-05, %v264_v2 }
 0x2f1   :  { %428 = vrsqrt.f32 %v266_v3 }
 0x2f7   :  { %v427_v4 = vpop.eup %426 }
 0x2f8   :  { %v269_v6 = vmul.f32 %v427_v4, %v253_v54 }
 0x2fa   :  { %v278_v8 = vmul.f32 %v311_v5, %v269_v6 }
 0x2fb   :  { %v429_v9 = vpop.eup %428 }
 0x2fc   :  { %v270_v10 = vmul.f32 %v429_v9, %v254_v58  ;;  %v287_v11 = vadd.f32 %v312_v7, %v278_v8 }
 0x2fe   :  { %v279_v12 = vmul.f32 %v311_v5, %v270_v10  ;;  %289 = vst.msk [vmem:[#allocation3] sm:$0xff] %vm42_vm0, %v287_v11 }
 0x300   :  { %v288_v13 = vadd.f32 %v312_v7, %v279_v12 }
 0x302   :  { %290 = vst.msk [vmem:[#allocation3 + $0x8] sm:$0xff] %vm42_vm0, %v288_v13 }
 0x303   :  { %441 = shalt.err (!%p438_p4)
}
 0x304   :  { %s442_s27 = scalar_lea.hbm %s606_s7, 256 }
 0x305   :  { %p443_p5 = scmp.ne.s32.totalorder %s606_s7, %s442_s27  ;;  %p446_p6 = scmp.lt.u32.totalorder %s442_s27, %s606_s7 }
 0x307   :  { %p448_p7 = pnand %p446_p6, %p443_p5 }
 0x309   :  { %451 = shalt.err (!%p448_p7)
}
 0x30a   :  { %s455_s0 = smov 128   ;;  %s456_s9 = smov 8  }
 0x30b   :  { %302 = dma.vmem_to_hbm [thread:$0]  %s297_s25, 256, %s606_s7, [#allocation4], %s455_s0, %s455_s0, %s456_s9  }
 0x30c   :  { %452 = dma.done.wait [#allocation4], 256  }
 0x30d   :  { %453 = vsyncadd [#allocation4], 4294967040 }
 0x30e   :  { %306 = vsyncpa [#allocation4], 1 }

</bundles_post_ra>
